<compile_context>
chip_gen: v7x
topology: tpu7x:2x2x1
jax: 0.10.0
libtpu: 0.0.40
codegen_flags: <defaults>
</compile_context>

<pallas_src>
import functools

import jax
import jax.numpy as jnp
from jax.experimental import pallas as pl
from jax.experimental.pallas import tpu as pltpu


def _round_up(x: int, m: int) -> int:
    return ((x + m - 1) // m) * m


def _mlp_kernel(*refs, num_layers: int):
    # refs = (x_ref, w0_ref, b0_ref, w1_ref, b1_ref, ..., o_ref)
    x_ref = refs[0]
    o_ref = refs[-1]
    h = x_ref[...].astype(jnp.float32)
    for i in range(num_layers):
        w_ref = refs[1 + 2 * i]
        b_ref = refs[2 + 2 * i]
        h = jnp.dot(h, w_ref[...].astype(jnp.float32),
                    preferred_element_type=jnp.float32)
        h = h + b_ref[...].astype(jnp.float32)  # (1, N) broadcast over rows
        if i < num_layers - 1:
            h = jnp.maximum(h, 0.0)  # ReLU on every layer except the last
    o_ref[...] = h.astype(o_ref.dtype)


def _fused_mlp_call(x2d, params, tm: int):
    """One pallas_call computing all layers; x2d is (M, K0) with M % tm == 0."""
    M, K0 = x2d.shape
    num_layers = len(params)
    N_out = params[-1][0].shape[1]

    in_specs = [pl.BlockSpec((tm, K0), lambda i: (i, 0))]
    flat_args = [x2d]
    flops = 0
    bytes_accessed = x2d.size * x2d.dtype.itemsize
    for (w, b) in params:
        Kw, Nw = w.shape
        # Full-array block with a grid-invariant index_map -> DMA'd once,
        # stays resident in VMEM for the whole grid.
        in_specs.append(pl.BlockSpec((Kw, Nw), lambda i: (0, 0)))
        in_specs.append(pl.BlockSpec((1, Nw), lambda i: (0, 0)))
        flat_args += [w, b]
        flops += 2 * M * Kw * Nw
        bytes_accessed += w.size * w.dtype.itemsize + b.size * b.dtype.itemsize
    bytes_accessed += M * N_out * x2d.dtype.itemsize

    kernel = functools.partial(_mlp_kernel, num_layers=num_layers)
    return pl.pallas_call(
        kernel,
        out_shape=jax.ShapeDtypeStruct((M, N_out), x2d.dtype),
        grid_spec=pltpu.PrefetchScalarGridSpec(
            num_scalar_prefetch=0,
            grid=(M // tm,),
            in_specs=in_specs,
            out_specs=pl.BlockSpec((tm, N_out), lambda i: (i, 0)),
        ),
        compiler_params=pltpu.CompilerParams(
            dimension_semantics=("parallel",)),
        cost_estimate=pl.CostEstimate(
            flops=flops, transcendentals=0, bytes_accessed=bytes_accessed),
    )(*flat_args)


def _pick_row_tile(M: int, dims: list[int], tm_max: int) -> int:
    """Largest row tile <= tm_max that fits a conservative VMEM budget."""
    widest = max(dims)
    # Double-buffered input tile + double-buffered output tile + widest
    # intermediate, all f32.  Keep well under the default scoped VMEM limit.
    budget = 24 * 1024 * 1024
    tm = min(tm_max, _round_up(M, 8))
    tm = max(8, _round_up(tm, 8))
    while tm > 8 and (4 * tm * widest * 5) > budget:
        tm //= 2
    return max(8, _round_up(tm, 8))


def mlp_forward(x, params, *, tm_max: int = 512):
    """Mirror of MLP.forward: relu after every layer except the last."""
    orig_shape = x.shape
    K0 = orig_shape[-1]
    M = 1
    for d in orig_shape[:-1]:
        M *= d
    h2d = x.reshape(M, K0)

    dims = [K0] + [w.shape[1] for (w, _) in params]
    row_tile = _pick_row_tile(M, dims, tm_max)
    M_pad = _round_up(M, row_tile)
    if M_pad != M:
        h2d = jnp.pad(h2d, ((0, M_pad - M), (0, 0)))

    out = _fused_mlp_call(h2d, params, row_tile)
    out = out[:M]
    return out.reshape(orig_shape[:-1] + (out.shape[-1],))


def init_mlp_params(key, input_dim, hidden_dim, output_dim, num_layers):
    """Deterministic synthetic init matching nn.Linear shapes.

    PyTorch stores weight as (out, in); here we keep (in, out) so the kernel
    does x @ W directly.
    """
    hs = [hidden_dim] * (num_layers - 1)
    dims_in = [input_dim] + hs
    dims_out = hs + [output_dim]
    params = []
    for n_in, n_out in zip(dims_in, dims_out):
        key, kw, kb = jax.random.split(key, 3)
        bound = 1.0 / (n_in ** 0.5)
        w = jax.random.uniform(kw, (n_in, n_out), jnp.float32, -bound, bound)
        b = jax.random.uniform(kb, (1, n_out), jnp.float32, -bound, bound)
        params.append((w, b))
    return params


def _reference(x, params, num_layers):
    h = x.reshape(-1, x.shape[-1])
    for i, (w, b) in enumerate(params):
        h = h @ w + b
        if i < num_layers - 1:
            h = jnp.maximum(h, 0.0)
    return h.reshape(x.shape[:-1] + (h.shape[-1],))


if __name__ == "__main__":
    input_dim, hidden_dim, output_dim, num_layers = 32, 64, 16, 3

    key = jax.random.PRNGKey(0)
    key, kx = jax.random.split(key)
    params = init_mlp_params(key, input_dim, hidden_dim, output_dim, num_layers)

    # Case 1: small shape consistent with the module, x (batch, seq, input_dim).
    batch, seq = 2, 8
    x = jax.random.normal(kx, (batch, seq, input_dim), dtype=jnp.float32)
    y = jax.block_until_ready(mlp_forward(x, params))
    ref = _reference(x, params, num_layers)
    assert y.shape == (batch, seq, output_dim)
    assert jnp.allclose(y, ref, atol=1e-5, rtol=1e-5)

    # Case 2: ragged row count (batch*seq not a multiple of 8) exercises the
    # pad-and-slice tail path instead of asserting divisibility.
    key, kx2 = jax.random.split(key)
    x2 = jax.random.normal(kx2, (3, 5, input_dim), dtype=jnp.float32)
    y2 = jax.block_until_ready(mlp_forward(x2, params))
    ref2 = _reference(x2, params, num_layers)
    assert y2.shape == (3, 5, output_dim)
    assert jnp.allclose(y2, ref2, atol=1e-5, rtol=1e-5)

    print("KERNEL_OK")
</pallas_src>

<mosaic_0001>
module attributes {stable_mosaic.version = 11 : i64} {
  func.func @_mlp_kernel(%arg0: i32, %arg1: memref<16x32xf32, #tpu.memory_space<vmem>>, %arg2: memref<32x64xf32, #tpu.memory_space<vmem>>, %arg3: memref<1x64xf32, #tpu.memory_space<vmem>>, %arg4: memref<64x64xf32, #tpu.memory_space<vmem>>, %arg5: memref<1x64xf32, #tpu.memory_space<vmem>>, %arg6: memref<64x16xf32, #tpu.memory_space<vmem>>, %arg7: memref<1x16xf32, #tpu.memory_space<vmem>>, %arg8: memref<16x16xf32, #tpu.memory_space<vmem>>) attributes {dimension_semantics = [#tpu.dimension_semantics<parallel>], iteration_bounds = array<i64: 1>, scalar_prefetch = 0 : i64, scratch_operands = 0 : i64, tpu.core_type = #tpu.core_type<tc>, window_params = [{transform_indices = @transform_0, window_bounds = array<i64: 16, 32>}, {pipeline_mode = #tpu.pipeline_mode<synchronous>, transform_indices = @transform_1, window_bounds = array<i64: 32, 64>}, {pipeline_mode = #tpu.pipeline_mode<synchronous>, transform_indices = @transform_2, window_bounds = array<i64: 1, 64>}, {pipeline_mode = #tpu.pipeline_mode<synchronous>, transform_indices = @transform_3, window_bounds = array<i64: 64, 64>}, {pipeline_mode = #tpu.pipeline_mode<synchronous>, transform_indices = @transform_4, window_bounds = array<i64: 1, 64>}, {pipeline_mode = #tpu.pipeline_mode<synchronous>, transform_indices = @transform_5, window_bounds = array<i64: 64, 16>}, {pipeline_mode = #tpu.pipeline_mode<synchronous>, transform_indices = @transform_6, window_bounds = array<i64: 1, 16>}, {transform_indices = @transform_7, window_bounds = array<i64: 16, 16>}]} {
    %c0 = arith.constant 0 : index
    %c0_0 = arith.constant 0 : index
    %0 = vector.load %arg1[%c0, %c0_0] : memref<16x32xf32, #tpu.memory_space<vmem>>, vector<16x32xf32>
    %c0_1 = arith.constant 0 : index
    %c0_2 = arith.constant 0 : index
    %1 = vector.load %arg2[%c0_1, %c0_2] : memref<32x64xf32, #tpu.memory_space<vmem>>, vector<32x64xf32>
    %cst = arith.constant dense<0.000000e+00> : vector<16x64xf32>
    %2 = tpu.matmul %0, %1, %cst {dimension_numbers = #tpu.dot_dimension_numbers<[1], [0], [0], [1], [0, 0, 1, 1], [], []>} : vector<16x32xf32>, vector<32x64xf32>, vector<16x64xf32> -> vector<16x64xf32>
    %c0_3 = arith.constant 0 : index
    %c0_4 = arith.constant 0 : index
    %3 = vector.load %arg3[%c0_3, %c0_4] : memref<1x64xf32, #tpu.memory_space<vmem>>, vector<1x64xf32>
    %4 = vector.broadcast %3 : vector<1x64xf32> to vector<16x64xf32>
    %5 = arith.addf %2, %4 : vector<16x64xf32>
    %cst_5 = arith.constant 0.000000e+00 : f32
    %6 = vector.broadcast %cst_5 : f32 to vector<16x64xf32>
    %7 = arith.maximumf %5, %6 : vector<16x64xf32>
    %c0_6 = arith.constant 0 : index
    %c0_7 = arith.constant 0 : index
    %8 = vector.load %arg4[%c0_6, %c0_7] : memref<64x64xf32, #tpu.memory_space<vmem>>, vector<64x64xf32>
    %cst_8 = arith.constant dense<0.000000e+00> : vector<16x64xf32>
    %9 = tpu.matmul %7, %8, %cst_8 {dimension_numbers = #tpu.dot_dimension_numbers<[1], [0], [0], [1], [0, 0, 1, 1], [], []>} : vector<16x64xf32>, vector<64x64xf32>, vector<16x64xf32> -> vector<16x64xf32>
    %c0_9 = arith.constant 0 : index
    %c0_10 = arith.constant 0 : index
    %10 = vector.load %arg5[%c0_9, %c0_10] : memref<1x64xf32, #tpu.memory_space<vmem>>, vector<1x64xf32>
    %11 = vector.broadcast %10 : vector<1x64xf32> to vector<16x64xf32>
    %12 = arith.addf %9, %11 : vector<16x64xf32>
    %cst_11 = arith.constant 0.000000e+00 : f32
    %13 = vector.broadcast %cst_11 : f32 to vector<16x64xf32>
    %14 = arith.maximumf %12, %13 : vector<16x64xf32>
    %c0_12 = arith.constant 0 : index
    %c0_13 = arith.constant 0 : index
    %15 = vector.load %arg6[%c0_12, %c0_13] : memref<64x16xf32, #tpu.memory_space<vmem>>, vector<64x16xf32>
    %cst_14 = arith.constant dense<0.000000e+00> : vector<16x16xf32>
    %16 = tpu.matmul %14, %15, %cst_14 {dimension_numbers = #tpu.dot_dimension_numbers<[1], [0], [0], [1], [0, 0, 1, 1], [], []>} : vector<16x64xf32>, vector<64x16xf32>, vector<16x16xf32> -> vector<16x16xf32>
    %c0_15 = arith.constant 0 : index
    %c0_16 = arith.constant 0 : index
    %17 = vector.load %arg7[%c0_15, %c0_16] : memref<1x16xf32, #tpu.memory_space<vmem>>, vector<1x16xf32>
    %18 = vector.broadcast %17 : vector<1x16xf32> to vector<16x16xf32>
    %19 = arith.addf %16, %18 : vector<16x16xf32>
    %c0_17 = arith.constant 0 : index
    %c0_18 = arith.constant 0 : index
    %20 = vector.load %arg8[%c0_17, %c0_18] : memref<16x16xf32, #tpu.memory_space<vmem>>, vector<16x16xf32>
    tpu.vector_store %arg8[%c0_17, %c0_18], %19 {strides = array<i32>} : memref<16x16xf32, #tpu.memory_space<vmem>>, vector<16x16xf32>,
    return
  }
  func.func @transform_0(%arg0: i32) -> (i32, i32) {
    %c0_i32 = arith.constant 0 : i32
    %c0_i32_0 = arith.constant 0 : i32
    return %arg0, %c0_i32 : i32, i32
  }
  func.func @transform_1(%arg0: i32) -> (i32, i32) {
    %c0_i32 = arith.constant 0 : i32
    %c0_i32_0 = arith.constant 0 : i32
    %c0_i32_1 = arith.constant 0 : i32
    return %c0_i32, %c0_i32_0 : i32, i32
  }
  func.func @transform_2(%arg0: i32) -> (i32, i32) {
    %c0_i32 = arith.constant 0 : i32
    %c0_i32_0 = arith.constant 0 : i32
    %c0_i32_1 = arith.constant 0 : i32
    return %c0_i32, %c0_i32_0 : i32, i32
  }
  func.func @transform_3(%arg0: i32) -> (i32, i32) {
    %c0_i32 = arith.constant 0 : i32
    %c0_i32_0 = arith.constant 0 : i32
    %c0_i32_1 = arith.constant 0 : i32
    return %c0_i32, %c0_i32_0 : i32, i32
  }
  func.func @transform_4(%arg0: i32) -> (i32, i32) {
    %c0_i32 = arith.constant 0 : i32
    %c0_i32_0 = arith.constant 0 : i32
    %c0_i32_1 = arith.constant 0 : i32
    return %c0_i32, %c0_i32_0 : i32, i32
  }
  func.func @transform_5(%arg0: i32) -> (i32, i32) {
    %c0_i32 = arith.constant 0 : i32
    %c0_i32_0 = arith.constant 0 : i32
    %c0_i32_1 = arith.constant 0 : i32
    return %c0_i32, %c0_i32_0 : i32, i32
  }
  func.func @transform_6(%arg0: i32) -> (i32, i32) {
    %c0_i32 = arith.constant 0 : i32
    %c0_i32_0 = arith.constant 0 : i32
    %c0_i32_1 = arith.constant 0 : i32
    return %c0_i32, %c0_i32_0 : i32, i32
  }
  func.func @transform_7(%arg0: i32) -> (i32, i32) {
    %c0_i32 = arith.constant 0 : i32
    %c0_i32_0 = arith.constant 0 : i32
    return %arg0, %c0_i32 : i32, i32
  }
}

</mosaic_0001>

<bundles_post_ra>
// kernel: tpu_custom_call.1
= control target key start
LH: loop header
LB: loop body
LE: loop exit
PB: predicated region body
PF: predicated region fallthrough
CT: control target
= control target key end

     0   :  { %12 = vsyncpa [#allocation3], 0  ;;  %s672_s0 = inlined_call_operand.vmem [shape: f32[16,32], index: 0, kind: input, shape index: {}]   ;;  %s673_s1 = inlined_call_operand.hbm [shape: f32[32,64], index: 1, kind: input, shape index: {}]   ;;  %s674_s2 = inlined_call_operand.vmem [shape: f32[1,64], index: 2, kind: input, shape index: {}]   ;;  %s675_s3 = inlined_call_operand.vmem [shape: f32[64,64], index: 3, kind: input, shape index: {}]   ;;  %s676_s4 = inlined_call_operand.vmem [shape: f32[1,64], index: 4, kind: input, shape index: {}]   ;;  %s677_s5 = inlined_call_operand.vmem [shape: f32[64,16], index: 5, kind: input, shape index: {}]   ;;  %s678_s6 = inlined_call_operand.vmem [shape: f32[1,16], index: 6, kind: input, shape index: {}]   ;;  %s679_s7 = inlined_call_operand.hbm [shape: f32[16,16], index: 7, kind: output, shape index: {}]  }
   0x1   :  { %13 = vsyncpa [#allocation4], 0  ;;  %s529_s24 = smov [#allocation2]   ;;  %s481_s28 = scalar_lea.hbm %s673_s1, 512 }
   0x2   :  { %s21_s25 = sshll.u32 %s529_s24, 4  ;;  %p482_p0 = scmp.ne.s32.totalorder %s673_s1, %s481_s28  ;;  %s22_s25 = int_to_ptr.vmem [resolvable:$true] %s21_s25 }
   0x3   :  { %p485_p1 = scmp.lt.u32.totalorder %s481_s28, %s673_s1 }
   0x5   :  { %p487_p2 = pnand %p485_p1, %p482_p0 }
   0x7   :  { %490 = shalt.err (!%p487_p2)
}
   0x8   :  { %s491_s10 = scalar_lea.vmem %s22_s25, 512  ;;  %p496_p4 = scmp.lt.s32.totalorder %s22_s25, %s22_s25 }
   0x9   :  { %p492_p3 = scmp.ne.s32.totalorder %s22_s25, %s491_s10  ;;  %p497_p5 = scmp.lt.s32.totalorder %s491_s10, %s491_s10 }
   0xb   :  { %p498_p6 = por %p497_p5, %p496_p4 }
   0xd   :  { %p499_p7 = pnand %p498_p6, %p492_p3 }
   0xf   :  { %502 = shalt.err (!%p499_p7)
}
  0x10   :  { %s530_s11 = smov 128   ;;  %s531_s12 = smov 8  }
  0x11   :  { %27 = dma.hbm_to_vmem [thread:$0]  %s673_s1, 512, %s22_s25, [#allocation3], %s530_s11, %s530_s11, %s531_s12  }
  0x12   :  { %525 = dma.done.wait [#allocation3], 512  }
  0x13   :  { %526 = vsyncadd [#allocation3], 4294966784  ;;  %vm54_vm0 = vcmask 261120   ;;  %v43_v0 = vld [vmem:[#allocation2] sm:$0xff]  ;;  %v44_v1 = vld [vmem:[#allocation2 + $0x8] sm:$0xff]  ;;  %vm153_vm1 = vcmask 523264  }
  0x14   :  { %v45_v2 = vld [vmem:[#allocation2 + $0x10] sm:$0xff]  ;;  %v437_v3 = vpack.c.bf16 %v44_v1, %v43_v0  ;;  %v46_v4 = vld [vmem:[#allocation2 + $0x18] sm:$0xff]  ;;  %v41_v5 = vld [vmem:[%s672_s0] sm:$0xff]  ;;  %vm333_vm2 = vcmask 130048  }
  0x15   :  { %v441_v6 = vpack.c.bf16 %v46_v4, %v45_v2  ;;  %396 = vmatprep.mubr.msk.f32.mxu0 %vm54_vm0, %v41_v5  ;;  %v138_v7 = vld [vmem:[%s675_s3] sm:$0xff]  ;;  %v139_v8 = vld [vmem:[%s675_s3 + $0x8] sm:$0xff]  ;;  %v140_v9 = vld [vmem:[%s675_s3 + $0x10] sm:$0xff] }
  0x16   :  { %438 = vmatprep.subr.bf16.mxu0 %v437_v3  ;;  %v445_v10 = vpack.c.bf16 %v139_v8, %v138_v7  ;;  %v141_v11 = vld [vmem:[%s675_s3 + $0x18] sm:$0xff]  ;;  %v142_v13 = vld [vmem:[%s675_s3 + $0x20] sm:$0xff]  ;;  %v143_v14 = vld [vmem:[%s675_s3 + $0x28] sm:$0xff] }
  0x17   :  { %440 = vmatpush3.bf16.msra.mxu0 %v437_v3  ;;  %v449_v12 = vpack.c.bf16 %v141_v11, %v140_v9  ;;  %v453_v15 = vpack.c.bf16 %v143_v14, %v142_v13  ;;  %v42_v16 = vld [vmem:[%s672_s0 + $0x8] sm:$0xff]  ;;  %v144_v17 = vld [vmem:[%s675_s3 + $0x30] sm:$0xff]  ;;  %v145_v18 = vld [vmem:[%s675_s3 + $0x38] sm:$0xff] }
  0x18   :  { %442 = vmatprep.subr.bf16.mxu0 %v441_v6  ;;  %446 = vmatprep.subr.bf16.mxu1 %v445_v10  ;;  %v457_v19 = vpack.c.bf16 %v145_v18, %v144_v17  ;;  %v237_v20 = vld [vmem:[%s677_s5] sm:$0xff]  ;;  %v238_v21 = vld [vmem:[%s677_s5 + $0x8] sm:$0xff]  ;;  %v239_v22 = vld [vmem:[%s677_s5 + $0x10] sm:$0xff] }
  0x19   :  { %448 = vmatpush3.bf16.msra.mxu1 %v445_v10  ;;  %v461_v23 = vpack.c.bf16 %v238_v21, %v237_v20  ;;  %v240_v24 = vld [vmem:[%s677_s5 + $0x18] sm:$0xff]  ;;  %v241_v26 = vld [vmem:[%s677_s5 + $0x20] sm:$0xff]  ;;  %v242_v27 = vld [vmem:[%s677_s5 + $0x28] sm:$0xff] }
  0x1a   :  { %450 = vmatprep.subr.bf16.mxu1 %v449_v12  ;;  %v465_v25 = vpack.c.bf16 %v240_v24, %v239_v22  ;;  %v469_v28 = vpack.c.bf16 %v242_v27, %v241_v26  ;;  %v353_v29 = vld [vmem:[%s674_s2] ss:$0 sm:$0xff]  ;;  %v243_v36 = vld [vmem:[%s677_s5 + $0x30] sm:$0xff]  ;;  %v244_v37 = vld [vmem:[%s677_s5 + $0x38] sm:$0xff]  ;;  %s532_s5 = smov [#allocation5]  }
  0x1b   :  { %444 = vmatpush3.bf16.msra.mxu0 %v441_v6  ;;  %v473_v38 = vpack.c.bf16 %v244_v37, %v243_v36  ;;  %v356_v39 = vld [vmem:[%s676_s4] ss:$0 sm:$0xff]  ;;  %s341_s8 = sshll.u32 %s532_s5, 4  ;;  %s342_s8 = int_to_ptr.vmem [resolvable:$true] %s341_s8 }
  0x1c   :  { %462 = vmatprep.subr.bf16.mxu0 %v461_v23  ;;  %v359_v46 = vld [vmem:[%s678_s6] ss:$0 sm:$0xff]  ;;  %s503_s4 = scalar_lea.vmem %s342_s8, 256  ;;  %p508_p9 = scmp.lt.s32.totalorder %s342_s8, %s342_s8 }
  0x1d   :  { %452 = vmatpush3.bf16.msra.mxu1 %v449_v12  ;;  %p504_p8 = scmp.ne.s32.totalorder %s342_s8, %s503_s4  ;;  %p509_p10 = scmp.lt.s32.totalorder %s503_s4, %s503_s4 }
  0x1e   :  { %397 = vmatmul.mubr.msk.f32.vlgmr.msra.gmra.mrb[0].mxu0 %vm54_vm0, %v42_v16  ;;  %454 = vmatprep.subr.bf16.mxu1 %v453_v15 }
  0x1f   :  { %464 = vmatpush3.bf16.msra.mxu0 %v461_v23  ;;  %p510_p11 = por %p509_p10, %p508_p9 }
  0x20   :  { %466 = vmatprep.subr.bf16.mxu0 %v465_v25 }
  0x21   :  { %456 = vmatpush3.bf16.msra.mxu1 %v453_v15  ;;  %p511_p12 = pnand %p510_p11, %p504_p8 }
  0x22   :  { %458 = vmatprep.subr.bf16.mxu1 %v457_v19 }
  0x23   :  { %468 = vmatpush3.bf16.msra.mxu0 %v465_v25 }
  0x24   :  { %470 = vmatprep.subr.bf16.mxu0 %v469_v28 }
  0x25   :  { %460 = vmatpush3.bf16.msra.mxu1 %v457_v19 }
  0x27   :  { %472 = vmatpush3.bf16.msra.mxu0 %v469_v28 }
  0x28   :  { %474 = vmatprep.subr.bf16.mxu0 %v473_v38 }
  0x2b   :  { %476 = vmatpush3.bf16.msra.mxu0 %v473_v38 }
  0xf1   :  { %v398_v30 = vpop.f32.mrb[0].mxu0 }
  0xf2   :  { %v133_v31 = vadd.f32 %v398_v30, %v353_v29  ;;  %v127_v32 = vpop.f32.mrb[1].mxu0 }
  0xf3   :  { %v128_v33 = vadd.f32 %v353_v29, %v127_v32 }
  0xf4   :  { %v137_v35 = vmax.f32 %v133_v31, 0.0 }
  0xf5   :  { %v136_v34 = vmax.f32 %v128_v33, 0.0 }
  0xf7   :  { %415 = vmatprep.mubr.msk.f32.mxu1 %vm153_vm1, %v136_v34 }
  0xf8   :  { %416 = vmatmul.mubr.msk.f32.vlgmr.msra.gmra.mrb[0].mxu1 %vm153_vm1, %v137_v35 }
 0x1cb   :  { %v417_v40 = vpop.f32.mrb[0].mxu1 }
 0x1cc   :  { %v232_v41 = vadd.f32 %v417_v40, %v356_v39  ;;  %v226_v42 = vpop.f32.mrb[1].mxu1 }
 0x1cd   :  { %v227_v43 = vadd.f32 %v356_v39, %v226_v42 }
 0x1ce   :  { %v236_v45 = vmax.f32 %v232_v41, 0.0 }
 0x1cf   :  { %v235_v44 = vmax.f32 %v227_v43, 0.0 }
 0x1d1   :  { %434 = vmatprep.mubr.msk.f32.mxu0 %vm153_vm1, %v235_v44 }
 0x1d2   :  { %435 = vmatmul.mubr.msk.f32.vlgmr.msra.gmra.mrb[2].mxu0 %vm153_vm1, %v236_v45 }
 0x2a5   :  { %v436_v47 = vpop.f32.mrb[2].mxu0 }
 0x2a6   :  { %v330_v48 = vadd.f32 %v436_v47, %v359_v46  ;;  %v324_v49 = vpop.f32.mrb[3].mxu0 }
 0x2a7   :  { %v325_v50 = vadd.f32 %v359_v46, %v324_v49 }
 0x2a8   :  { %335 = vst.msk [vmem:[#allocation5 + $0x8] sm:$0xff] %vm333_vm2, %v330_v48 }
 0x2a9   :  { %334 = vst.msk [vmem:[#allocation5] sm:$0xff] %vm333_vm2, %v325_v50 }
 0x2aa   :  { %514 = shalt.err (!%p511_p12)
}
 0x2ab   :  { %s515_s6 = scalar_lea.hbm %s679_s7, 256 }
 0x2ac   :  { %p516_p13 = scmp.ne.s32.totalorder %s679_s7, %s515_s6  ;;  %p519_p0 = scmp.lt.u32.totalorder %s515_s6, %s679_s7 }
 0x2ae   :  { %p521_p1 = pnand %p519_p0, %p516_p13 }
 0x2b0   :  { %524 = shalt.err (!%p521_p1)
}
 0x2b1   :  { %347 = dma.vmem_to_hbm [thread:$0]  %s342_s8, 256, %s679_s7, [#allocation4], %s530_s11, %s530_s11, %s531_s12  }
 0x2b2   :  { %527 = dma.done.wait [#allocation4], 256  }
 0x2b3   :  { %528 = vsyncadd [#allocation4], 4294967040 }
 0x2b4   :  { %351 = vsyncpa [#allocation3], 1 }
 0x2b5   :  { %352 = vsyncpa [#allocation4], 1 }

</bundles_post_ra>
